<compile_context>
chip_gen: v6e
topology: v6e:2x2x1
jax: 0.10.0
libtpu: 0.0.40
codegen_flags: <defaults>
</compile_context>

<pallas_src>
import jax
import jax.numpy as jnp
from jax.experimental import pallas as pl
from jax.experimental.pallas import tpu as pltpu

NUM_EMG_CHANNELS = 9

_VMEM = pl.BlockSpec(memory_space=pltpu.MemorySpace.VMEM)


# ---------------------------------------------------------------------------
# Fused Pallas kernel: all LSTM-step layers (both towers) + fc, one call.
# ---------------------------------------------------------------------------
def _lstm_step(x, w_ref, b_ref):
    """One LSTM step from zero state with the dead f-gate removed.

    x:      (B, In)   current activations (values already in vregs)
    w_ref:  (In, 3H)  = weight_ih^T with gate order [i, g, o]
    b_ref:  (1, 3H)   = (bias_ih + bias_hh) with gate order [i, g, o]
    returns (B, H)    hidden state
    """
    hid = b_ref.shape[1] // 3
    gates = jnp.dot(x, w_ref[...], preferred_element_type=jnp.float32)
    gates = gates + b_ref[...]
    i_g = jax.nn.sigmoid(gates[:, 0 * hid:1 * hid])
    g_g = jnp.tanh(gates[:, 1 * hid:2 * hid])
    o_g = jax.nn.sigmoid(gates[:, 2 * hid:3 * hid])
    c = i_g * g_g
    return o_g * jnp.tanh(c)


def make_fused_kernel(n_emg_layers, n_imu_layers):
    """Builds a kernel with signature:
       kernel(emg_ref, imu_ref,
              we0, be0, ..., wi0, bi0, ...,   # per-layer (In,3H)/(1,3H)
              fc_we, fc_wi, fc_b,             # (He,C), (Hi,C), (1,C)
              out_ref)                        # (B, C)
    """

    def kernel(*refs):
        emg_ref, imu_ref = refs[0], refs[1]
        out_ref = refs[-1]
        idx = 2

        x = emg_ref[...]
        for _ in range(n_emg_layers):
            x = _lstm_step(x, refs[idx], refs[idx + 1])
            idx += 2

        y = imu_ref[...]
        for _ in range(n_imu_layers):
            y = _lstm_step(y, refs[idx], refs[idx + 1])
            idx += 2

        fc_we, fc_wi, fc_b = refs[idx], refs[idx + 1], refs[idx + 2]
        # concat([x, y]) @ W^T expressed as a split matmul on resident values.
        out_ref[...] = (
            jnp.dot(x, fc_we[...], preferred_element_type=jnp.float32)
            + jnp.dot(y, fc_wi[...], preferred_element_type=jnp.float32)
            + fc_b[...]
        ).astype(out_ref.dtype)

    return kernel


# ---------------------------------------------------------------------------
# Parameter construction (deterministic, PyTorch-like uniform init).
# The full 4-gate PyTorch tensors are generated, then the dead f-gate block
# is sliced out so the kernel only ever sees [i | g | o].
# ---------------------------------------------------------------------------
def _uniform(key, shape, bound):
    return jax.random.uniform(key, shape, jnp.float32, minval=-bound, maxval=bound)


def init_params(key, emg_input_size, imu_input_size,
                hidden_sizes_emg, hidden_sizes_imu, num_classes):
    params = {"emg": [], "imu": []}

    def make_lstm_stack(key, input_size, hidden_sizes):
        layers = []
        in_sz = input_size
        for hid in hidden_sizes:
            key, k1, k2, k3, k4 = jax.random.split(key, 5)
            bound = float(hid) ** -0.5
            w_ih = _uniform(k1, (4 * hid, in_sz), bound)     # weight_ih_l0
            b_ih = _uniform(k2, (4 * hid,), bound)
            b_hh = _uniform(k3, (4 * hid,), bound)
            # weight_hh is irrelevant for seq_len==1 with zero init state.
            _ = _uniform(k4, (4 * hid, hid), bound)
            b = b_ih + b_hh
            # Drop the dead f-gate (rows [H:2H]); keep [i, g, o] contiguous.
            keep = jnp.concatenate(
                [jnp.arange(0, hid), jnp.arange(2 * hid, 4 * hid)])
            w3 = w_ih[keep]                                  # (3H, In)
            b3 = b[keep]                                     # (3H,)
            layers.append({
                "w_t": jnp.asarray(w3.T),                    # (In, 3H)
                "b": b3.reshape(1, 3 * hid),                 # (1, 3H)
            })
            in_sz = hid
        return key, layers

    key, params["emg"] = make_lstm_stack(key, emg_input_size, hidden_sizes_emg)
    key, params["imu"] = make_lstm_stack(key, imu_input_size, hidden_sizes_imu)

    fc_in = hidden_sizes_emg[-1] + hidden_sizes_imu[-1]
    key, kw, kb = jax.random.split(key, 3)
    bound = float(fc_in) ** -0.5
    w_fc = _uniform(kw, (num_classes, fc_in), bound)         # nn.Linear weight
    b_fc = _uniform(kb, (num_classes,), bound)
    params["fc_w_e"] = jnp.asarray(w_fc[:, :hidden_sizes_emg[-1]].T)   # (He, C)
    params["fc_w_i"] = jnp.asarray(w_fc[:, hidden_sizes_emg[-1]:].T)   # (Hi, C)
    params["fc_b"] = b_fc.reshape(1, num_classes)
    return params


# ---------------------------------------------------------------------------
# Forward pass: one fused pallas_call for the whole network.
# ---------------------------------------------------------------------------
@jax.jit
def forward(params, emg, imu):
    batch = emg.shape[0]
    # emg.reshape(B, 1, 36) / imu.unsqueeze(1): seq_len == 1 -> keep 2-D.
    x = emg.reshape(batch, NUM_EMG_CHANNELS * 4).astype(jnp.float32)
    y = imu.astype(jnp.float32)

    flat = []
    for layer in params["emg"]:
        flat += [layer["w_t"], layer["b"]]
    for layer in params["imu"]:
        flat += [layer["w_t"], layer["b"]]
    flat += [params["fc_w_e"], params["fc_w_i"], params["fc_b"]]

    kernel = make_fused_kernel(len(params["emg"]), len(params["imu"]))
    num_classes = params["fc_b"].shape[1]

    return pl.pallas_call(
        kernel,
        out_shape=jax.ShapeDtypeStruct((batch, num_classes), jnp.float32),
        in_specs=[_VMEM] * (2 + len(flat)),
        out_specs=_VMEM,
    )(x, y, *flat)


# Pure-JAX reference (correctness sanity check).
def forward_ref(params, emg, imu):
    def cell(x, layer):
        hid = layer["b"].shape[1] // 3
        gates = x @ layer["w_t"] + layer["b"]
        i_g = jax.nn.sigmoid(gates[:, 0 * hid:1 * hid])
        g_g = jnp.tanh(gates[:, 1 * hid:2 * hid])
        o_g = jax.nn.sigmoid(gates[:, 2 * hid:3 * hid])
        return o_g * jnp.tanh(i_g * g_g)

    x = emg.reshape(emg.shape[0], NUM_EMG_CHANNELS * 4).astype(jnp.float32)
    for layer in params["emg"]:
        x = cell(x, layer)
    y = imu.astype(jnp.float32)
    for layer in params["imu"]:
        y = cell(y, layer)
    return x @ params["fc_w_e"] + y @ params["fc_w_i"] + params["fc_b"]


if __name__ == "__main__":
    # Small shapes consistent with the module:
    #   emg: (B, 9, 4) -> reshaped to (B, 1, 36); imu: (B, 18) -> (B, 1, 18)
    batch = 2
    imu_input_size = 18
    hidden_sizes_emg = [32, 32]
    hidden_sizes_imu = [32]
    num_classes = 5

    key = jax.random.PRNGKey(0)
    key, k_emg, k_imu, k_par = jax.random.split(key, 4)
    emg = jax.random.normal(k_emg, (batch, NUM_EMG_CHANNELS, 4), jnp.float32)
    imu = jax.random.normal(k_imu, (batch, imu_input_size), jnp.float32)

    params = init_params(
        k_par,
        emg_input_size=NUM_EMG_CHANNELS * 4,
        imu_input_size=imu_input_size,
        hidden_sizes_emg=hidden_sizes_emg,
        hidden_sizes_imu=hidden_sizes_imu,
        num_classes=num_classes,
    )

    out = forward(params, emg, imu)
    out = jax.block_until_ready(out)

    ref = forward_ref(params, emg, imu)
    assert out.shape == (batch, num_classes)
    assert jnp.allclose(out, ref, atol=1e-5, rtol=1e-5)

    print("KERNEL_OK")
</pallas_src>

<mosaic_0001>
module attributes {stable_mosaic.version = 11 : i64} {
  func.func @kernel(%arg0: memref<2x36xf32, #tpu.memory_space<vmem>>, %arg1: memref<2x18xf32, #tpu.memory_space<vmem>>, %arg2: memref<36x96xf32, #tpu.memory_space<vmem>>, %arg3: memref<1x96xf32, #tpu.memory_space<vmem>>, %arg4: memref<32x96xf32, #tpu.memory_space<vmem>>, %arg5: memref<1x96xf32, #tpu.memory_space<vmem>>, %arg6: memref<18x96xf32, #tpu.memory_space<vmem>>, %arg7: memref<1x96xf32, #tpu.memory_space<vmem>>, %arg8: memref<32x5xf32, #tpu.memory_space<vmem>>, %arg9: memref<32x5xf32, #tpu.memory_space<vmem>>, %arg10: memref<1x5xf32, #tpu.memory_space<vmem>>, %arg11: memref<2x5xf32, #tpu.memory_space<vmem>>) attributes {dimension_semantics = [], scalar_prefetch = 0 : i64, scratch_operands = 0 : i64, tpu.core_type = #tpu.core_type<tc>} {
    %c0 = arith.constant 0 : index
    %c0_0 = arith.constant 0 : index
    %0 = vector.load %arg0[%c0, %c0_0] : memref<2x36xf32, #tpu.memory_space<vmem>>, vector<2x36xf32>
    %c0_1 = arith.constant 0 : index
    %c0_2 = arith.constant 0 : index
    %1 = vector.load %arg2[%c0_1, %c0_2] : memref<36x96xf32, #tpu.memory_space<vmem>>, vector<36x96xf32>
    %cst = arith.constant dense<0.000000e+00> : vector<2x96xf32>
    %2 = tpu.matmul %0, %1, %cst {dimension_numbers = #tpu.dot_dimension_numbers<[1], [0], [0], [1], [0, 0, 1, 1], [], []>} : vector<2x36xf32>, vector<36x96xf32>, vector<2x96xf32> -> vector<2x96xf32>
    %c0_3 = arith.constant 0 : index
    %c0_4 = arith.constant 0 : index
    %3 = vector.load %arg3[%c0_3, %c0_4] : memref<1x96xf32, #tpu.memory_space<vmem>>, vector<1x96xf32>
    %4 = vector.broadcast %3 : vector<1x96xf32> to vector<2x96xf32>
    %5 = arith.addf %2, %4 : vector<2x96xf32>
    %6 = vector.extract_strided_slice %5 {offsets = [0, 0], sizes = [2, 32], strides = [1, 1]} : vector<2x96xf32> to vector<2x32xf32>
    %7 = arith.negf %6 : vector<2x32xf32>
    %8 = math.exp %7 : vector<2x32xf32>
    %cst_5 = arith.constant 1.000000e+00 : f32
    %9 = vector.broadcast %cst_5 : f32 to vector<2x32xf32>
    %10 = arith.addf %9, %8 : vector<2x32xf32>
    %11 = arith.divf %9, %10 : vector<2x32xf32>
    %12 = vector.extract_strided_slice %5 {offsets = [0, 32], sizes = [2, 32], strides = [1, 1]} : vector<2x96xf32> to vector<2x32xf32>
    %13 = math.tanh %12 : vector<2x32xf32>
    %14 = vector.extract_strided_slice %5 {offsets = [0, 64], sizes = [2, 32], strides = [1, 1]} : vector<2x96xf32> to vector<2x32xf32>
    %15 = arith.negf %14 : vector<2x32xf32>
    %16 = math.exp %15 : vector<2x32xf32>
    %cst_6 = arith.constant 1.000000e+00 : f32
    %17 = vector.broadcast %cst_6 : f32 to vector<2x32xf32>
    %18 = arith.addf %17, %16 : vector<2x32xf32>
    %19 = arith.divf %17, %18 : vector<2x32xf32>
    %20 = arith.mulf %11, %13 : vector<2x32xf32>
    %21 = math.tanh %20 : vector<2x32xf32>
    %22 = arith.mulf %19, %21 : vector<2x32xf32>
    %c0_7 = arith.constant 0 : index
    %c0_8 = arith.constant 0 : index
    %23 = vector.load %arg4[%c0_7, %c0_8] : memref<32x96xf32, #tpu.memory_space<vmem>>, vector<32x96xf32>
    %cst_9 = arith.constant dense<0.000000e+00> : vector<2x96xf32>
    %24 = tpu.matmul %22, %23, %cst_9 {dimension_numbers = #tpu.dot_dimension_numbers<[1], [0], [0], [1], [0, 0, 1, 1], [], []>} : vector<2x32xf32>, vector<32x96xf32>, vector<2x96xf32> -> vector<2x96xf32>
    %c0_10 = arith.constant 0 : index
    %c0_11 = arith.constant 0 : index
    %25 = vector.load %arg5[%c0_10, %c0_11] : memref<1x96xf32, #tpu.memory_space<vmem>>, vector<1x96xf32>
    %26 = vector.broadcast %25 : vector<1x96xf32> to vector<2x96xf32>
    %27 = arith.addf %24, %26 : vector<2x96xf32>
    %28 = vector.extract_strided_slice %27 {offsets = [0, 0], sizes = [2, 32], strides = [1, 1]} : vector<2x96xf32> to vector<2x32xf32>
    %29 = arith.negf %28 : vector<2x32xf32>
    %30 = math.exp %29 : vector<2x32xf32>
    %cst_12 = arith.constant 1.000000e+00 : f32
    %31 = vector.broadcast %cst_12 : f32 to vector<2x32xf32>
    %32 = arith.addf %31, %30 : vector<2x32xf32>
    %33 = arith.divf %31, %32 : vector<2x32xf32>
    %34 = vector.extract_strided_slice %27 {offsets = [0, 32], sizes = [2, 32], strides = [1, 1]} : vector<2x96xf32> to vector<2x32xf32>
    %35 = math.tanh %34 : vector<2x32xf32>
    %36 = vector.extract_strided_slice %27 {offsets = [0, 64], sizes = [2, 32], strides = [1, 1]} : vector<2x96xf32> to vector<2x32xf32>
    %37 = arith.negf %36 : vector<2x32xf32>
    %38 = math.exp %37 : vector<2x32xf32>
    %cst_13 = arith.constant 1.000000e+00 : f32
    %39 = vector.broadcast %cst_13 : f32 to vector<2x32xf32>
    %40 = arith.addf %39, %38 : vector<2x32xf32>
    %41 = arith.divf %39, %40 : vector<2x32xf32>
    %42 = arith.mulf %33, %35 : vector<2x32xf32>
    %43 = math.tanh %42 : vector<2x32xf32>
    %44 = arith.mulf %41, %43 : vector<2x32xf32>
    %c0_14 = arith.constant 0 : index
    %c0_15 = arith.constant 0 : index
    %45 = vector.load %arg1[%c0_14, %c0_15] : memref<2x18xf32, #tpu.memory_space<vmem>>, vector<2x18xf32>
    %c0_16 = arith.constant 0 : index
    %c0_17 = arith.constant 0 : index
    %46 = vector.load %arg6[%c0_16, %c0_17] : memref<18x96xf32, #tpu.memory_space<vmem>>, vector<18x96xf32>
    %cst_18 = arith.constant dense<0.000000e+00> : vector<2x96xf32>
    %47 = tpu.matmul %45, %46, %cst_18 {dimension_numbers = #tpu.dot_dimension_numbers<[1], [0], [0], [1], [0, 0, 1, 1], [], []>} : vector<2x18xf32>, vector<18x96xf32>, vector<2x96xf32> -> vector<2x96xf32>
    %c0_19 = arith.constant 0 : index
    %c0_20 = arith.constant 0 : index
    %48 = vector.load %arg7[%c0_19, %c0_20] : memref<1x96xf32, #tpu.memory_space<vmem>>, vector<1x96xf32>
    %49 = vector.broadcast %48 : vector<1x96xf32> to vector<2x96xf32>
    %50 = arith.addf %47, %49 : vector<2x96xf32>
    %51 = vector.extract_strided_slice %50 {offsets = [0, 0], sizes = [2, 32], strides = [1, 1]} : vector<2x96xf32> to vector<2x32xf32>
    %52 = arith.negf %51 : vector<2x32xf32>
    %53 = math.exp %52 : vector<2x32xf32>
    %cst_21 = arith.constant 1.000000e+00 : f32
    %54 = vector.broadcast %cst_21 : f32 to vector<2x32xf32>
    %55 = arith.addf %54, %53 : vector<2x32xf32>
    %56 = arith.divf %54, %55 : vector<2x32xf32>
    %57 = vector.extract_strided_slice %50 {offsets = [0, 32], sizes = [2, 32], strides = [1, 1]} : vector<2x96xf32> to vector<2x32xf32>
    %58 = math.tanh %57 : vector<2x32xf32>
    %59 = vector.extract_strided_slice %50 {offsets = [0, 64], sizes = [2, 32], strides = [1, 1]} : vector<2x96xf32> to vector<2x32xf32>
    %60 = arith.negf %59 : vector<2x32xf32>
    %61 = math.exp %60 : vector<2x32xf32>
    %cst_22 = arith.constant 1.000000e+00 : f32
    %62 = vector.broadcast %cst_22 : f32 to vector<2x32xf32>
    %63 = arith.addf %62, %61 : vector<2x32xf32>
    %64 = arith.divf %62, %63 : vector<2x32xf32>
    %65 = arith.mulf %56, %58 : vector<2x32xf32>
    %66 = math.tanh %65 : vector<2x32xf32>
    %67 = arith.mulf %64, %66 : vector<2x32xf32>
    %c0_23 = arith.constant 0 : index
    %c0_24 = arith.constant 0 : index
    %68 = vector.load %arg8[%c0_23, %c0_24] : memref<32x5xf32, #tpu.memory_space<vmem>>, vector<32x5xf32>
    %cst_25 = arith.constant dense<0.000000e+00> : vector<2x5xf32>
    %69 = tpu.matmul %44, %68, %cst_25 {dimension_numbers = #tpu.dot_dimension_numbers<[1], [0], [0], [1], [0, 0, 1, 1], [], []>} : vector<2x32xf32>, vector<32x5xf32>, vector<2x5xf32> -> vector<2x5xf32>
    %c0_26 = arith.constant 0 : index
    %c0_27 = arith.constant 0 : index
    %70 = vector.load %arg9[%c0_26, %c0_27] : memref<32x5xf32, #tpu.memory_space<vmem>>, vector<32x5xf32>
    %cst_28 = arith.constant dense<0.000000e+00> : vector<2x5xf32>
    %71 = tpu.matmul %67, %70, %cst_28 {dimension_numbers = #tpu.dot_dimension_numbers<[1], [0], [0], [1], [0, 0, 1, 1], [], []>} : vector<2x32xf32>, vector<32x5xf32>, vector<2x5xf32> -> vector<2x5xf32>
    %72 = arith.addf %69, %71 : vector<2x5xf32>
    %c0_29 = arith.constant 0 : index
    %c0_30 = arith.constant 0 : index
    %73 = vector.load %arg10[%c0_29, %c0_30] : memref<1x5xf32, #tpu.memory_space<vmem>>, vector<1x5xf32>
    %74 = vector.broadcast %73 : vector<1x5xf32> to vector<2x5xf32>
    %75 = arith.addf %72, %74 : vector<2x5xf32>
    %c0_31 = arith.constant 0 : index
    %c0_32 = arith.constant 0 : index
    %76 = vector.load %arg11[%c0_31, %c0_32] : memref<2x5xf32, #tpu.memory_space<vmem>>, vector<2x5xf32>
    tpu.vector_store %arg11[%c0_31, %c0_32], %75 {strides = array<i32>} : memref<2x5xf32, #tpu.memory_space<vmem>>, vector<2x5xf32>,
    return
  }
}

</mosaic_0001>

<bundles_post_ra>
// kernel: forward.1
= control target key start
LH: loop header
LB: loop body
LE: loop exit
PB: predicated region body
PF: predicated region fallthrough
CT: control target
= control target key end

     0   :  { %vm56_vm0 = vcmask 1043456   ;;  %v687_v1 = vmov 0.0   ;;  %vm688_vm1 = vmmov 0   ;;  %s875_s0 = inlined_call_operand.vmem [shape: f32[2,36], index: 0, kind: input, shape index: {}]   ;;  %s876_s1 = inlined_call_operand.vmem [shape: f32[2,18], index: 1, kind: input, shape index: {}]   ;;  %s877_s2 = inlined_call_operand.vmem [shape: f32[36,96], index: 2, kind: input, shape index: {}]   ;;  %s878_s3 = inlined_call_operand.vmem [shape: f32[1,96], index: 3, kind: input, shape index: {}]   ;;  %s879_s4 = inlined_call_operand.vmem [shape: f32[32,96], index: 4, kind: input, shape index: {}]   ;;  %s880_s5 = inlined_call_operand.vmem [shape: f32[1,96], index: 5, kind: input, shape index: {}]   ;;  %s881_s6 = inlined_call_operand.vmem [shape: f32[18,96], index: 6, kind: input, shape index: {}]   ;;  %s882_s7 = inlined_call_operand.vmem [shape: f32[1,96], index: 7, kind: input, shape index: {}]   ;;  %s883_s8 = inlined_call_operand.vmem [shape: f32[32,5], index: 8, kind: input, shape index: {}]   ;;  %s884_s9 = inlined_call_operand.vmem [shape: f32[32,5], index: 9, kind: input, shape index: {}]   ;;  %s885_s10 = inlined_call_operand.vmem [shape: f32[1,5], index: 10, kind: input, shape index: {}]   ;;  %s886_s11 = inlined_call_operand.hbm [shape: f32[2,5], index: 11, kind: output, shape index: {}]  }
   0x1   :  { %v44_v0 = vld [vmem:[%s877_s2 + $0x20] sm:$0xf]  ;;  %581 = vmatprep.subr.mxu0 %v687_v1  ;;  %v43_v2 = vld [vmem:[%s877_s2 + $0x18] sm:$0xff]  ;;  %594 = vmatprep.subr.mxu1 %v687_v1 }
   0x2   :  { %582 = vmatpush3.msk.msra.mxu0 %vm56_vm0, %v44_v0  ;;  %591 = vmatprep.mubr.msk.f32.mxu0 %vm688_vm1, %v687_v1 }
   0x3   :  { %16 = vsyncpa [#allocation3], 0  ;;  %583 = vmatprep.subr.mxu0 %v687_v1  ;;  %v42_v3 = vld [vmem:[%s877_s2 + $0x10] sm:$0xff]  ;;  %602 = vmatprep.mubr.msk.f32.mxu1 %vm688_vm1, %v687_v1  ;;  %v41_v4 = vld [vmem:[%s877_s2 + $0x8] sm:$0xff]  ;;  %vm52_vm2 = vcmask 293888   ;;  %s690_s18 = smov 64  }
   0x4   :  { %584 = vmatpush3.msra.mxu0 %v43_v2  ;;  %v40_v5 = vld [vmem:[%s877_s2] sm:$0xff]  ;;  %v151_v18 = vld [vmem:[%s879_s4 + $0x18] sm:$0xff]  ;;  %v150_v19 = vld [vmem:[%s879_s4 + $0x10] sm:$0xff]  ;;  %vm162_vm3 = vcmask 261120   ;;  %vm268_vm4 = vcmask 1041408   ;;  %vm264_vm5 = vcmask 146432  }
   0x5   :  { %585 = vmatprep.subr.mxu0 %v687_v1  ;;  %v39_v6 = vld [vmem:[%s875_s0] sm:$0x3]  ;;  %s689_s0 = smov 96   ;;  %595 = vmatpush3.msra.mxu1 %v151_v18  ;;  %v149_v20 = vld [vmem:[%s879_s4 + $0x8] sm:$0xff]  ;;  %v256_v25 = vld [vmem:[%s881_s6 + $0x10] sm:$0x3] }
   0x6   :  { %586 = vmatpush3.msra.mxu0 %v42_v3  ;;  %v542_v7 = vld [vmem:[%s878_s3] ss:$0 sm:$0xff]  ;;  %596 = vmatprep.subr.mxu1 %v687_v1  ;;  %v255_v27 = vld [vmem:[%s881_s6 + $0x8] sm:$0xff]  ;;  %v363_v52 = vld [vmem:[%s883_s8 + $0x18] sm:$0xff]  ;;  %vm526_vm6 = vcmask 33792  }
   0x7   :  { %587 = vmatprep.subr.mxu0 %v687_v1  ;;  %597 = vmatpush3.msra.mxu1 %v150_v19  ;;  %v148_v21 = vld [vmem:[%s879_s4] sm:$0xff]  ;;  %v362_v53 = vld [vmem:[%s883_s8 + $0x10] sm:$0xff]  ;;  %v367_v54 = vld [vmem:[%s884_s9 + $0x18] sm:$0xff]  ;;  %s691_s4 = smov [#allocation2]  }
   0x8   :  { %588 = vmatpush3.msra.mxu0 %v41_v4  ;;  %598 = vmatprep.subr.mxu1 %v687_v1  ;;  %v254_v28 = vld [vmem:[%s881_s6] sm:$0xff]  ;;  %v361_v55 = vld [vmem:[%s883_s8 + $0x8] sm:$0xff]  ;;  %v366_v59 = vld [vmem:[%s884_s9 + $0x10] sm:$0xff]  ;;  %s534_s21 = sshll.u32 %s691_s4, 4  ;;  %s535_s21 = int_to_ptr.vmem [resolvable:$true] %s534_s21 }
   0x9   :  { %589 = vmatprep.subr.mxu0 %v687_v1  ;;  %599 = vmatpush3.msra.mxu1 %v149_v20  ;;  %v253_v29 = vld [vmem:[%s876_s1] sm:$0x3]  ;;  %v365_v60 = vld [vmem:[%s884_s9 + $0x8] sm:$0xff]  ;;  %p670_p1 = scmp.lt.s32.totalorder %s535_s21, %s535_s21 }
   0xa   :  { %590 = vmatpush3.msra.mxu0 %v40_v5  ;;  %600 = vmatprep.subr.mxu1 %v687_v1  ;;  %v546_v30 = vld [vmem:[%s880_s5] ss:$0 sm:$0xff] }
   0xb   :  { %592 = vmatmul.mubr.msk.f32.vlgmr.msra.gmra.mxu0 %vm52_vm2, %v39_v6  ;;  %614 = vmatprep.subr.mxu0 %v687_v1  ;;  %v549_v34 = vld [vmem:[%s882_s7] ss:$0 sm:$0xff] }
   0xc   :  { %622 = vmatprep.mubr.msk.f32.mxu0 %vm688_vm1, %v687_v1  ;;  %601 = vmatpush3.msra.mxu1 %v148_v21  ;;  %v360_v57 = vld [vmem:[%s883_s8] sm:$0xff] }
   0xd   :  { %605 = vmatprep.subr.mxu1 %v687_v1  ;;  %615 = vmatpush3.msra.mxu0 %v367_v54  ;;  %v364_v61 = vld [vmem:[%s884_s9] sm:$0xff] }
   0xe   :  { %616 = vmatprep.subr.mxu0 %v687_v1 }
   0xf   :  { %617 = vmatpush3.msra.mxu0 %v366_v59 }
  0x10   :  { %618 = vmatprep.subr.mxu0 %v687_v1 }
  0x11   :  { %619 = vmatpush3.msra.mxu0 %v365_v60 }
  0x12   :  { %620 = vmatprep.subr.mxu0 %v687_v1 }
  0x13   :  { %621 = vmatpush3.msra.mxu0 %v364_v61 }
  0xcb   :  { %v126_v8 = vpop.f32.mrf.mxu0 }
  0xcc   :  { %v127_v9 = vadd.f32 %v542_v7, %v126_v8 }
  0xcd   :  { %v593_v10 = vpop.f32.mrf.mxu0 }
  0xce   :  { %641 = vtanh.f32 %v127_v9  ;;  %v545_v12 = vmul.f32 -1.442695, %v127_v9 }
  0xd0   :  { %643 = vpow2.f32 %v545_v12 }
  0xdb   :  { %v642_v11 = vpop.eup %641 }
  0xdc   :  { %138 = vrot.lane.b32.xlu0 %v642_v11, %s689_s0 }
  0xdd   :  { %v644_v13 = vpop.eup %643 }
  0xde   :  { %v133_v14 = vadd.f32 1.0, %v644_v13 }
  0xe0   :  { %645 = vrcp.f32 %v133_v14 }
  0xed   :  { %v646_v15 = vpop.eup %645 }
 0x14e   :  { %v139_v16 = vpop.permute.xlu0 %138 }
 0x14f   :  { %v141_v17 = vmul.f32 %v646_v15, %v139_v16 }
 0x151   :  { %647 = vtanh.f32 %v141_v17 }
 0x15e   :  { %v648_v22 = vpop.eup %647 }
 0x15f   :  { %144 = vrot.lane.b32.xlu0 %v648_v22, %s690_s18 }
 0x1d1   :  { %v145_v23 = vpop.permute.xlu0 %144 }
 0x1d2   :  { %v147_v24 = vmul.f32 %v646_v15, %v145_v23 }
 0x1d4   :  { %160 = vrot.lane.b32.xlu1 %v147_v24, %s690_s18 }
 0x246   :  { %v161_v26 = vpop.permute.xlu1 %160 }
 0x247   :  { %603 = vmatmul.mubr.msk.f32.vlgmr.msra.gmra.mxu1 %vm162_vm3, %v161_v26 }
 0x248   :  { %606 = vmatpush3.msk.msra.mxu1 %vm268_vm4, %v256_v25  ;;  %611 = vmatprep.mubr.msk.f32.mxu1 %vm688_vm1, %v687_v1 }
 0x249   :  { %607 = vmatprep.subr.mxu1 %v687_v1 }
 0x24a   :  { %608 = vmatpush3.msra.mxu1 %v255_v27 }
 0x24b   :  { %609 = vmatprep.subr.mxu1 %v687_v1 }
 0x24c   :  { %610 = vmatpush3.msra.mxu1 %v254_v28 }
 0x24d   :  { %612 = vmatmul.mubr.msk.f32.vlgmr.msra.gmra.mxu1 %vm264_vm5, %v253_v29  ;;  %625 = vmatprep.subr.mxu1 %v687_v1 }
 0x24e   :  { %633 = vmatprep.mubr.msk.f32.mxu1 %vm688_vm1, %v687_v1  ;;  %626 = vmatpush3.msra.mxu1 %v363_v52 }
 0x24f   :  { %627 = vmatprep.subr.mxu1 %v687_v1 }
 0x250   :  { %628 = vmatpush3.msra.mxu1 %v362_v53 }
 0x251   :  { %629 = vmatprep.subr.mxu1 %v687_v1 }
 0x252   :  { %630 = vmatpush3.msra.mxu1 %v361_v55 }
 0x253   :  { %631 = vmatprep.subr.mxu1 %v687_v1  ;;  %v555_v1 = vld [vmem:[%s885_s10] ss:$0 sm:$0xff] }
 0x254   :  { %632 = vmatpush3.msra.mxu1 %v360_v57 }
 0x307   :  { %v231_v31 = vpop.f32.mrf.mxu1 }
 0x308   :  { %v232_v32 = vadd.f32 %v546_v30, %v231_v31 }
 0x309   :  { %v604_v33 = vpop.f32.mrf.mxu1 }
 0x30a   :  { %649 = vtanh.f32 %v232_v32  ;;  %v548_v40 = vmul.f32 -1.442695, %v232_v32 }
 0x30d   :  { %v338_v35 = vpop.f32.mrf.mxu1 }
 0x30e   :  { %v339_v36 = vadd.f32 %v549_v34, %v338_v35 }
 0x30f   :  { %v613_v37 = vpop.f32.mrf.mxu1 }
 0x310   :  { %651 = vtanh.f32 %v339_v36  ;;  %v552_v41 = vmul.f32 -1.442695, %v339_v36 }
 0x311   :  { %653 = vpow2.f32 %v548_v40 }
 0x312   :  { %655 = vpow2.f32 %v552_v41 }
 0x317   :  { %v650_v38 = vpop.eup %649 }
 0x318   :  { %243 = vrot.lane.b32.xlu1 %v650_v38, %s689_s0 }
 0x31d   :  { %v652_v39 = vpop.eup %651 }
 0x31e   :  { %350 = vrot.lane.b32.xlu0 %v652_v39, %s689_s0  ;;  %v654_v42 = vpop.eup %653 }
 0x31f   :  { %v238_v43 = vadd.f32 1.0, %v654_v42  ;;  %v656_v44 = vpop.eup %655 }
 0x320   :  { %v345_v45 = vadd.f32 1.0, %v656_v44 }
 0x321   :  { %657 = vrcp.f32 %v238_v43 }
 0x322   :  { %659 = vrcp.f32 %v345_v45 }
 0x32e   :  { %v658_v46 = vpop.eup %657 }
 0x32f   :  { %v660_v49 = vpop.eup %659 }
 0x38a   :  { %v244_v47 = vpop.permute.xlu1 %243 }
 0x38b   :  { %v246_v48 = vmul.f32 %v658_v46, %v244_v47 }
 0x38d   :  { %661 = vtanh.f32 %v246_v48 }
 0x390   :  { %v351_v50 = vpop.permute.xlu0 %350 }
 0x391   :  { %v353_v51 = vmul.f32 %v660_v49, %v351_v50 }
 0x393   :  { %663 = vtanh.f32 %v353_v51 }
 0x39a   :  { %v662_v56 = vpop.eup %661 }
 0x39b   :  { %249 = vrot.lane.b32.xlu1 %v662_v56, %s690_s18 }
 0x3a0   :  { %v664_v58 = vpop.eup %663 }
 0x3a1   :  { %356 = vrot.lane.b32.xlu0 %v664_v58, %s690_s18 }
 0x40d   :  { %v250_v62 = vpop.permute.xlu1 %249 }
 0x40e   :  { %v252_v63 = vmul.f32 %v658_v46, %v250_v62 }
 0x410   :  { %444 = vrot.lane.b32.xlu0 %v252_v63, %s690_s18 }
 0x413   :  { %v357_v0 = vpop.permute.xlu0 %356 }
 0x414   :  { %v359_v2 = vmul.f32 %v660_v49, %v357_v0 }
 0x416   :  { %369 = vrot.lane.b32.xlu1 %v359_v2, %s690_s18  ;;  %s665_s18 = scalar_lea.vmem %s535_s21, 32 }
 0x417   :  { %p666_p0 = scmp.ne.s32.totalorder %s535_s21, %s665_s18  ;;  %p671_p2 = scmp.lt.s32.totalorder %s665_s18, %s665_s18 }
 0x419   :  { %p672_p3 = por %p671_p2, %p670_p1 }
 0x41b   :  { %p673_p4 = pnand %p672_p3, %p666_p0 }
 0x482   :  { %v445_v3 = vpop.permute.xlu0 %444 }
 0x483   :  { %634 = vmatmul.mubr.msk.f32.vlgmr.msra.gmra.mxu1 %vm162_vm3, %v445_v3 }
 0x488   :  { %v370_v4 = vpop.permute.xlu1 %369 }
 0x489   :  { %623 = vmatmul.mubr.msk.f32.vlgmr.msra.gmra.mxu0 %vm162_vm3, %v370_v4 }
 0x543   :  { %v514_v5 = vpop.f32.mrf.mxu1 }
 0x545   :  { %v635_v6 = vpop.f32.mrf.mxu1 }
 0x549   :  { %v439_v7 = vpop.f32.mrf.mxu0 }
 0x54a   :  { %v515_v8 = vadd.f32 %v514_v5, %v439_v7 }
 0x54b   :  { %v624_v9 = vpop.f32.mrf.mxu0 }
 0x54c   :  { %v525_v10 = vadd.f32 %v555_v1, %v515_v8 }
 0x54e   :  { %527 = vst.msk [vmem:[#allocation2] sm:$0x3] %vm526_vm6, %v525_v10 }
 0x54f   :  { %676 = shalt.err (!%p673_p4)
}
 0x550   :  { %537 = dma.vmem_to_hbm [thread:$0]  %s535_s21, 32, %s886_s11, [#allocation3]  }
 0x551   :  { %685 = dma.done.wait [#allocation3], 32  }
 0x552   :  { %686 = vsyncadd [#allocation3], 4294967264 }
 0x553   :  { %541 = vsyncpa [#allocation3], 1 }

</bundles_post_ra>
